<compile_context>
chip_gen: v6e
topology: v6e:2x2x1
jax: 0.10.0
libtpu: 0.0.40
codegen_flags: <defaults>
</compile_context>

<pallas_src>
import functools
import math

import jax
import jax.numpy as jnp
from jax.experimental import pallas as pl
from jax.experimental.pallas import tpu as pltpu


def _layernorm_kernel(x_ref, a_ref, b_ref, o_ref, *, eps, d, g):
    # x_ref/o_ref: (tm, g*d)   a_ref/b_ref: (1, g*d)
    #
    # g original rows are folded into the lane axis so loads/stores are
    # lane-dense even when d < 128.  Rows past the true end of the array in a
    # partial last block may hold garbage; any NaN/Inf they produce is masked
    # away on writeback by Pallas, so it is harmless.
    xw = x_ref[...].astype(jnp.float32)               # (tm, g*d), lane-dense
    tm = xw.shape[0]
    x = xw.reshape(tm, g, d)                           # per-original-row view
    mean = jnp.mean(x, axis=-1, keepdims=True)         # (tm, g, 1)
    xc = x - mean
    # Unbiased variance (divide by d-1) to match torch.Tensor.std default.
    denom = d - 1 if d > 1 else 1                      # guard d == 1
    var = jnp.sum(xc * xc, axis=-1, keepdims=True) * (1.0 / denom)
    # eps is added to std (not to var) to match the reference module exactly.
    # Per-row reciprocal (tm*g values) instead of a (tm, g*d)-wide divide.
    inv = pl.reciprocal(jnp.sqrt(var) + eps, approx=False)
    yn = (xc * inv).reshape(tm, g * d)                 # back to lane-dense
    y = a_ref[...].astype(jnp.float32) * yn + b_ref[...].astype(jnp.float32)
    o_ref[...] = y.astype(o_ref.dtype)


def _round_up(x, m):
    return ((x + m - 1) // m) * m


def _cdiv(a, b):
    return (a + b - 1) // b


def _choose_tile_rows(n_rows, d_eff, itemsize, vmem_budget_bytes):
    # Per-row VMEM footprint: double-buffered input + double-buffered output
    # (io dtype) plus ~2 block-sized f32 temps that Mosaic materializes.
    per_row_vmem = d_eff * (4 * itemsize + 2 * 4)
    tm_vmem = max(8, (vmem_budget_bytes // per_row_vmem) // 8 * 8)
    # ~2 MiB of input per block amortizes the ~0.35 us per-grid-step overhead.
    target_in_bytes = 2 << 20
    tm_target = _round_up(max(1, target_in_bytes // (d_eff * itemsize)), 8)
    tm = max(8, min(tm_target, tm_vmem, _round_up(n_rows, 8)))
    # v7x megacore: give the "parallel" row axis >= 2 grid steps when there is
    # enough work so both TensorCores get a share (harmless on v5e/v6e).
    if _cdiv(n_rows, tm) == 1 and n_rows > 8:
        tm = max(8, _round_up(_cdiv(n_rows, 2), 8))
    return tm


@functools.partial(jax.jit, static_argnames=("eps",))
def layernorm_forward(x, a_2, b_2, *, eps=1e-6):
    """x: (..., D), a_2: (D,), b_2: (D,) -> same shape as x."""
    orig_shape = x.shape
    D = orig_shape[-1]
    N = math.prod(orig_shape[:-1]) if len(orig_shape) > 1 else 1
    itemsize = jnp.dtype(x.dtype).itemsize

    # Lane density: fold g rows into the lane axis when D < 128 so stored rows
    # span full 128-lane vregs (unmasked stores).  Falls back to the plain
    # (N, D) layout when D >= 128, D doesn't divide 128, or N % g != 0.
    g = 1
    if D < 128 and 128 % D == 0:
        g_cand = 128 // D
        if N % g_cand == 0:
            g = g_cand
    D_eff = g * D
    N_rows = N // g

    x2 = x.reshape(N_rows, D_eff)
    a2 = jnp.tile(a_2.reshape(1, D), (1, g))   # (1, g*D), tiny
    b2 = jnp.tile(b_2.reshape(1, D), (1, g))

    tm = _choose_tile_rows(N_rows, D_eff, itemsize, vmem_budget_bytes=24 << 20)
    # Partial last block (when N_rows % tm != 0) is masked by Pallas on
    # writeback — no host-side jnp.pad or output slice needed.
    grid = (_cdiv(N_rows, tm),)

    kernel = functools.partial(_layernorm_kernel, eps=float(eps), d=D, g=g)

    cost = pl.CostEstimate(
        flops=int(8 * N * D),
        transcendentals=int(2 * N),                       # sqrt + rcp per row
        bytes_accessed=int(2 * N * D * itemsize + 2 * D * 4),
    )

    out = pl.pallas_call(
        kernel,
        out_shape=jax.ShapeDtypeStruct((N_rows, D_eff), x.dtype),
        grid_spec=pltpu.PrefetchScalarGridSpec(
            num_scalar_prefetch=0,
            grid=grid,
            in_specs=[
                pl.BlockSpec((tm, D_eff), lambda i: (i, 0)),  # x row tile
                pl.BlockSpec((1, D_eff), lambda i: (0, 0)),   # scale (a_2)
                pl.BlockSpec((1, D_eff), lambda i: (0, 0)),   # shift (b_2)
            ],
            out_specs=pl.BlockSpec((tm, D_eff), lambda i: (i, 0)),
        ),
        compiler_params=pltpu.CompilerParams(
            dimension_semantics=("parallel",),
            vmem_limit_bytes=48 << 20,   # headroom under v7x's 64 MiB VMEM
        ),
        cost_estimate=cost,
    )(x2, a2, b2)

    return out.reshape(orig_shape)


def _reference(x, a_2, b_2, eps):
    # Pure-JAX reference matching torch semantics (unbiased std, eps on std).
    D = x.shape[-1]
    mean = x.mean(-1, keepdims=True)
    var = jnp.sum((x - mean) ** 2, axis=-1, keepdims=True) / (D - 1)
    std = jnp.sqrt(var)
    return a_2 * (x - mean) / (std + eps) + b_2


if __name__ == "__main__":
    eps = 1e-6
    key = jax.random.PRNGKey(0)
    kx1, kx2, kx3, ka, kb = jax.random.split(key, 5)

    # Case 1: module-default params (ones / zeros), transformer-style shapes
    # (batch=2, seq=8, features=32).  Exercises the lane-folded path (g=4).
    B, S, D = 2, 8, 32
    x1 = jax.random.normal(kx1, (B, S, D), jnp.float32)
    a_ones = jnp.ones((D,), jnp.float32)
    b_zeros = jnp.zeros((D,), jnp.float32)

    out1 = layernorm_forward(x1, a_ones, b_zeros, eps=eps)
    jax.block_until_ready(out1)
    ref1 = _reference(x1, a_ones, b_zeros, eps)
    assert out1.shape == x1.shape
    assert jnp.allclose(out1, ref1, atol=1e-5, rtol=1e-5)

    # Case 2: non-trivial scale/shift, row count that divides neither the tile
    # nor the lane-fold factor -> exercises the fallback + partial-block path.
    x2 = jax.random.normal(kx2, (3, 5, D), jnp.float32)
    a2 = jax.random.normal(ka, (D,), jnp.float32)
    b2 = jax.random.normal(kb, (D,), jnp.float32)

    out2 = layernorm_forward(x2, a2, b2, eps=eps)
    jax.block_until_ready(out2)
    ref2 = _reference(x2, a2, b2, eps)
    assert out2.shape == x2.shape
    assert jnp.allclose(out2, ref2, atol=1e-5, rtol=1e-5)

    # Case 3: D = 128 (no folding), odd row count -> masked partial last block.
    x3 = jax.random.normal(kx3, (2, 7, 128), jnp.float32)
    a3 = jnp.ones((128,), jnp.float32)
    b3 = jnp.zeros((128,), jnp.float32)

    out3 = layernorm_forward(x3, a3, b3, eps=eps)
    jax.block_until_ready(out3)
    ref3 = _reference(x3, a3, b3, eps)
    assert out3.shape == x3.shape
    assert jnp.allclose(out3, ref3, atol=1e-5, rtol=1e-5)

    print("KERNEL_OK")
</pallas_src>

<mosaic_0001>
module attributes {stable_mosaic.version = 11 : i64} {
  func.func @_layernorm_kernel(%arg0: i32, %arg1: memref<8x128xf32, #tpu.memory_space<vmem>>, %arg2: memref<1x128xf32, #tpu.memory_space<vmem>>, %arg3: memref<1x128xf32, #tpu.memory_space<vmem>>, %arg4: memref<8x128xf32, #tpu.memory_space<vmem>>) attributes {dimension_semantics = [#tpu.dimension_semantics<parallel>], iteration_bounds = array<i64: 1>, scalar_prefetch = 0 : i64, scratch_operands = 0 : i64, tpu.core_type = #tpu.core_type<tc>, window_params = [{transform_indices = @transform_0, window_bounds = array<i64: 8, 128>}, {pipeline_mode = #tpu.pipeline_mode<synchronous>, transform_indices = @transform_1, window_bounds = array<i64: 1, 128>}, {pipeline_mode = #tpu.pipeline_mode<synchronous>, transform_indices = @transform_2, window_bounds = array<i64: 1, 128>}, {transform_indices = @transform_3, window_bounds = array<i64: 8, 128>}]} {
    %c0 = arith.constant 0 : index
    %c0_0 = arith.constant 0 : index
    %0 = vector.load %arg1[%c0, %c0_0] : memref<8x128xf32, #tpu.memory_space<vmem>>, vector<8x128xf32>
    %1 = vector.shape_cast %0 : vector<8x128xf32> to vector<8x4x32xf32>
    %cst = arith.constant dense<0.000000e+00> : vector<8x4xf32>
    %2 = vector.multi_reduction <add>, %1, %cst [2] : vector<8x4x32xf32> to vector<8x4xf32>
    %3 = vector.shape_cast %2 : vector<8x4xf32> to vector<8x4x1xf32>
    %cst_1 = arith.constant 3.200000e+01 : f32
    %4 = vector.broadcast %cst_1 : f32 to vector<8x4x1xf32>
    %5 = arith.divf %3, %4 : vector<8x4x1xf32>
    %6 = vector.broadcast %5 : vector<8x4x1xf32> to vector<8x4x32xf32>
    %7 = arith.subf %1, %6 : vector<8x4x32xf32>
    %8 = arith.mulf %7, %7 : vector<8x4x32xf32>
    %cst_2 = arith.constant dense<0.000000e+00> : vector<8x4xf32>
    %9 = vector.multi_reduction <add>, %8, %cst_2 [2] : vector<8x4x32xf32> to vector<8x4xf32>
    %10 = vector.shape_cast %9 : vector<8x4xf32> to vector<8x4x1xf32>
    %cst_3 = arith.constant 0.0322580636 : f32
    %11 = vector.broadcast %cst_3 : f32 to vector<8x4x1xf32>
    %12 = arith.mulf %10, %11 : vector<8x4x1xf32>
    %13 = math.sqrt %12 : vector<8x4x1xf32>
    %cst_4 = arith.constant 9.99999997E-7 : f32
    %14 = vector.broadcast %cst_4 : f32 to vector<8x4x1xf32>
    %15 = arith.addf %13, %14 : vector<8x4x1xf32>
    %16 = tpu.reciprocal %15 : vector<8x4x1xf32> -> vector<8x4x1xf32>
    %17 = vector.broadcast %16 : vector<8x4x1xf32> to vector<8x4x32xf32>
    %18 = arith.mulf %7, %17 : vector<8x4x32xf32>
    %19 = vector.shape_cast %18 : vector<8x4x32xf32> to vector<8x128xf32>
    %c0_5 = arith.constant 0 : index
    %c0_6 = arith.constant 0 : index
    %20 = vector.load %arg2[%c0_5, %c0_6] : memref<1x128xf32, #tpu.memory_space<vmem>>, vector<1x128xf32>
    %21 = vector.broadcast %20 : vector<1x128xf32> to vector<8x128xf32>
    %22 = arith.mulf %21, %19 : vector<8x128xf32>
    %c0_7 = arith.constant 0 : index
    %c0_8 = arith.constant 0 : index
    %23 = vector.load %arg3[%c0_7, %c0_8] : memref<1x128xf32, #tpu.memory_space<vmem>>, vector<1x128xf32>
    %24 = vector.broadcast %23 : vector<1x128xf32> to vector<8x128xf32>
    %25 = arith.addf %22, %24 : vector<8x128xf32>
    %c0_9 = arith.constant 0 : index
    %c0_10 = arith.constant 0 : index
    %26 = vector.load %arg4[%c0_9, %c0_10] : memref<8x128xf32, #tpu.memory_space<vmem>>, vector<8x128xf32>
    tpu.vector_store %arg4[%c0_9, %c0_10], %25 {strides = array<i32>} : memref<8x128xf32, #tpu.memory_space<vmem>>, vector<8x128xf32>,
    return
  }
  func.func @transform_0(%arg0: i32) -> (i32, i32) {
    %c0_i32 = arith.constant 0 : i32
    %c0_i32_0 = arith.constant 0 : i32
    return %arg0, %c0_i32 : i32, i32
  }
  func.func @transform_1(%arg0: i32) -> (i32, i32) {
    %c0_i32 = arith.constant 0 : i32
    %c0_i32_0 = arith.constant 0 : i32
    %c0_i32_1 = arith.constant 0 : i32
    return %c0_i32, %c0_i32_0 : i32, i32
  }
  func.func @transform_2(%arg0: i32) -> (i32, i32) {
    %c0_i32 = arith.constant 0 : i32
    %c0_i32_0 = arith.constant 0 : i32
    %c0_i32_1 = arith.constant 0 : i32
    return %c0_i32, %c0_i32_0 : i32, i32
  }
  func.func @transform_3(%arg0: i32) -> (i32, i32) {
    %c0_i32 = arith.constant 0 : i32
    %c0_i32_0 = arith.constant 0 : i32
    return %arg0, %c0_i32 : i32, i32
  }
}

</mosaic_0001>

<bundles_post_ra>
// kernel: layernorm_forward.1
= control target key start
LH: loop header
LB: loop body
LE: loop exit
PB: predicated region body
PF: predicated region fallthrough
CT: control target
= control target key end

     0   :  { %s439_s14 = smov 32   ;;  %s440_s15 = smov 96   ;;  %v442_v1 = vmov 1983009808   ;;  %v30_v3 = vlaneseq  ;;  %v443_v4 = vmov 1934713408   ;;  %s577_s0 = inlined_call_operand.vmem [shape: f32[4,128], index: 0, kind: input, shape index: {}]   ;;  %s578_s1 = inlined_call_operand.vmem [shape: f32[1,128], index: 1, kind: input, shape index: {}]   ;;  %s579_s2 = inlined_call_operand.vmem [shape: f32[1,128], index: 2, kind: input, shape index: {}]   ;;  %s580_s3 = inlined_call_operand.vmem [shape: f32[4,128], index: 3, kind: output, shape index: {}]  }
   0x1   :  { %v14_v0 = vld [vmem:[%s577_s0] sm:$0xff]  ;;  %s441_s16 = smov 64   ;;  %v28_v2 = vunpack.c.l.s4 %v442_v1  ;;  %v60_v5 = vunpack.c.l.s4 %v443_v4  ;;  %vm93_vm0 = vcmask 257024   ;;  %v444_v31 = vmov 0.0  }
   0x2   :  { %22 = vrot.lane.b32.xlu1 %v14_v0, %s439_s14  ;;  %16 = vrot.lane.b32.xlu0 %v14_v0, %s440_s15  ;;  %v31_v7 = vshrl.u32 %v30_v3, 7 }
   0x3   :  { %v29_v6 = vunpack.c.0.s8 %v28_v2  ;;  %v61_v10 = vunpack.c.0.s8 %v60_v5 }
   0x5   :  { %v471_v11 = vsub.s32 %v29_v6, %v31_v7  ;;  %v473_v17 = vsub.s32 %v61_v10, %v31_v7 }
   0x6   :  { %19 = vrot.lane.b32.xlu0 %v14_v0, %s441_s16 }
  0x74   :  { %v23_v8 = vpop.permute.xlu1 %22  ;;  %v17_v9 = vpop.permute.xlu0 %16 }
  0x75   :  { %v41_v12 = vcombine.low %v17_v9, %v23_v8  ;;  %v42_v13 = vcombine.high %v17_v9, %v23_v8 }
  0x77   :  { %v49_v18 = vrot.slane %v41_v12, %v471_v11  ;;  %v56_v19 = vrot.slane %v42_v13, %v471_v11 }
  0x78   :  { %v20_v14 = vpop.permute.xlu0 %19 }
  0x79   :  { %v25_v15 = vcombine.low %v14_v0, %v20_v14  ;;  %v26_v16 = vcombine.high %v14_v0, %v20_v14 }
  0x7b   :  { %v33_v20 = vrot.slane %v25_v15, %v471_v11  ;;  %v40_v21 = vrot.slane %v26_v16, %v471_v11 }
  0x7d   :  { %v57_v22 = vcombine.low %v33_v20, %v49_v18  ;;  %v58_v23 = vcombine.high %v33_v20, %v49_v18  ;;  %v73_v24 = vcombine.low %v40_v21, %v56_v19  ;;  %v74_v27 = vcombine.high %v40_v21, %v56_v19 }
  0x7f   :  { %v72_v25 = vrot.slane %v58_v23, %v473_v17  ;;  %v65_v26 = vrot.slane %v57_v22, %v473_v17  ;;  %v81_v30 = vrot.slane %v73_v24, %v473_v17  ;;  %v88_v33 = vrot.slane %v74_v27, %v473_v17 }
  0x81   :  { %v100_v28 = vsel %vm93_vm0, %v72_v25, 0.0  ;;  %v94_v29 = vsel %vm93_vm0, %v65_v26, 0.0  ;;  %v90_v32 = vcombine.high %v72_v25, %v444_v31  ;;  %v106_v34 = vsel %vm93_vm0, %v81_v30, 0.0 }
  0x82   :  { %101 = vadd.xlane.f32.xlu0 %v100_v28  ;;  %95 = vadd.xlane.f32.xlu1 %v94_v29  ;;  %v91_v36 = vcombine.high %v81_v30, %v444_v31  ;;  %v89_v37 = vcombine.high %v65_v26, %v444_v31  ;;  %v92_v40 = vcombine.high %v88_v33, %v444_v31  ;;  %v112_v42 = vsel %vm93_vm0, %v88_v33, 0.0 }
  0x83   :  { %v103_v35 = vsel %vm93_vm0, %v90_v32, 0.0 }
  0x84   :  { %v109_v38 = vsel %vm93_vm0, %v91_v36, 0.0  ;;  %v97_v39 = vsel %vm93_vm0, %v89_v37, 0.0  ;;  %v115_v41 = vsel %vm93_vm0, %v92_v40, 0.0 }
  0x86   :  { %107 = vadd.xlane.f32.xlu0 %v106_v34  ;;  %104 = vadd.xlane.f32.xlu1 %v103_v35 }
  0x8a   :  { %110 = vadd.xlane.f32.xlu1 %v109_v38  ;;  %98 = vadd.xlane.f32.xlu0 %v97_v39 }
  0x8e   :  { %116 = vadd.xlane.f32.xlu1 %v115_v41  ;;  %113 = vadd.xlane.f32.xlu0 %v112_v42 }
 0x10b   :  { %v102_v43 = vpop.xlane.xlu0 %101  ;;  %v96_v44 = vpop.xlane.xlu1 %95 }
 0x10c   :  { %v121_v45 = vmul.f32 0.03125, %v102_v43  ;;  %v119_v46 = vmul.f32 0.03125, %v96_v44 }
 0x10e   :  { %v491_v47 = vsub.f32 %v72_v25, %v121_v45  ;;  %v493_v48 = vsub.f32 %v65_v26, %v119_v46 }
 0x10f   :  { %v108_v49 = vpop.xlane.xlu0 %107  ;;  %v105_v50 = vpop.xlane.xlu1 %104 }
 0x110   :  { %v123_v51 = vmul.f32 0.03125, %v108_v49  ;;  %v135_v52 = vmul.f32 %v493_v48, %v493_v48  ;;  %v122_v53 = vmul.f32 0.03125, %v105_v50  ;;  %v137_v56 = vmul.f32 %v491_v47, %v491_v47 }
 0x112   :  { %v497_v54 = vsub.f32 %v81_v30, %v123_v51  ;;  %v143_v55 = vsel %vm93_vm0, %v135_v52, 0.0  ;;  %v502_v60 = vsub.f32 %v90_v32, %v122_v53  ;;  %v149_v63 = vsel %vm93_vm0, %v137_v56, 0.0 }
 0x113   :  { %v111_v57 = vpop.xlane.xlu1 %110  ;;  %144 = vadd.xlane.f32.xlu0 %v143_v55  ;;  %v99_v58 = vpop.xlane.xlu0 %98 }
 0x114   :  { %v120_v59 = vmul.f32 0.03125, %v99_v58  ;;  %v124_v61 = vmul.f32 0.03125, %v111_v57  ;;  %v139_v0 = vmul.f32 %v497_v54, %v497_v54  ;;  %v138_v6 = vmul.f32 %v502_v60, %v502_v60 }
 0x116   :  { %v504_v62 = vsub.f32 %v89_v37, %v120_v59  ;;  %v511_v5 = vsub.f32 %v91_v36, %v124_v61  ;;  %v155_v9 = vsel %vm93_vm0, %v139_v0, 0.0  ;;  %v152_v14 = vsel %vm93_vm0, %v138_v6, 0.0 }
 0x117   :  { %v117_v1 = vpop.xlane.xlu1 %116  ;;  %150 = vadd.xlane.f32.xlu0 %v149_v63  ;;  %v114_v2 = vpop.xlane.xlu0 %113 }
 0x118   :  { %v125_v3 = vmul.f32 0.03125, %v114_v2  ;;  %v136_v4 = vmul.f32 %v504_v62, %v504_v62  ;;  %v126_v7 = vmul.f32 0.03125, %v117_v1  ;;  %v140_v16 = vmul.f32 %v511_v5, %v511_v5 }
 0x11a   :  { %v515_v8 = vsub.f32 %v88_v33, %v125_v3  ;;  %v146_v10 = vsel %vm93_vm0, %v136_v4, 0.0  ;;  %v521_v13 = vsub.f32 %v92_v40, %v126_v7  ;;  %v158_v18 = vsel %vm93_vm0, %v140_v16, 0.0 }
 0x11b   :  { %156 = vadd.xlane.f32.xlu0 %v155_v9  ;;  %147 = vadd.xlane.f32.xlu1 %v146_v10 }
 0x11c   :  { %v141_v12 = vmul.f32 %v515_v8, %v515_v8  ;;  %v142_v19 = vmul.f32 %v521_v13, %v521_v13 }
 0x11e   :  { %v161_v15 = vsel %vm93_vm0, %v141_v12, 0.0  ;;  %v164_v20 = vsel %vm93_vm0, %v142_v19, 0.0 }
 0x11f   :  { %153 = vadd.xlane.f32.xlu1 %v152_v14  ;;  %162 = vadd.xlane.f32.xlu0 %v161_v15 }
 0x123   :  { %159 = vadd.xlane.f32.xlu1 %v158_v18 }
 0x127   :  { %165 = vadd.xlane.f32.xlu1 %v164_v20 }
 0x19c   :  { %v145_v21 = vpop.xlane.xlu0 %144 }
 0x19d   :  { %v167_v22 = vmul.f32 0.032258064, %v145_v21 }
 0x19f   :  { %407 = vrsqrt.f32 %v167_v22  ;;  %vm177_vm2 = vcmp.eq.f32.partialorder %v167_v22, inf  ;;  %vm179_vm3 = vcmp.eq.f32.partialorder %v167_v22, 0.0  ;;  %v180_v44 = vand.u32 2147483648, %v167_v22 }
 0x1a0   :  { %v151_v23 = vpop.xlane.xlu0 %150 }
 0x1a1   :  { %v169_v24 = vmul.f32 0.032258064, %v151_v23 }
 0x1a3   :  { %409 = vrsqrt.f32 %v169_v24  ;;  %vm191_vm1 = vcmp.eq.f32.partialorder %v169_v24, inf  ;;  %v194_v45 = vand.u32 2147483648, %v169_v24  ;;  %vm193_vm4 = vcmp.eq.f32.partialorder %v169_v24, 0.0 }
 0x1a4   :  { %v148_v25 = vpop.xlane.xlu1 %147  ;;  %v157_v26 = vpop.xlane.xlu0 %156 }
 0x1a5   :  { %v168_v27 = vmul.f32 0.032258064, %v148_v25  ;;  %v171_v28 = vmul.f32 0.032258064, %v157_v26 }
 0x1a7   :  { %411 = vrsqrt.f32 %v168_v27  ;;  %vm184_vm5 = vcmp.eq.f32.partialorder %v168_v27, inf  ;;  %vm186_vm6 = vcmp.eq.f32.partialorder %v168_v27, 0.0  ;;  %v187_v53 = vand.u32 2147483648, %v168_v27 }
 0x1a8   :  { %413 = vrsqrt.f32 %v171_v28  ;;  %v154_v29 = vpop.xlane.xlu1 %153  ;;  %v163_v30 = vpop.xlane.xlu0 %162  ;;  %vm205_vm7 = vcmp.eq.f32.partialorder %v171_v28, inf  ;;  %vm207_vm8 = vcmp.eq.f32.partialorder %v171_v28, 0.0  ;;  %v208_v56 = vand.u32 2147483648, %v171_v28 }
 0x1a9   :  { %v170_v31 = vmul.f32 0.032258064, %v154_v29  ;;  %v173_v32 = vmul.f32 0.032258064, %v163_v30 }
 0x1ab   :  { %415 = vrsqrt.f32 %v170_v31  ;;  %vm198_vm9 = vcmp.eq.f32.partialorder %v170_v31, inf  ;;  %vm200_vm10 = vcmp.eq.f32.partialorder %v170_v31, 0.0  ;;  %v201_v1 = vand.u32 2147483648, %v170_v31 }
 0x1ac   :  { %417 = vrsqrt.f32 %v173_v32  ;;  %v160_v33 = vpop.xlane.xlu1 %159  ;;  %v408_v35 = vpop.eup %407  ;;  %vm219_vm11 = vcmp.eq.f32.partialorder %v173_v32, inf  ;;  %vm221_vm12 = vcmp.eq.f32.partialorder %v173_v32, 0.0  ;;  %v222_v4 = vand.u32 2147483648, %v173_v32 }
 0x1ad   :  { %v531_v34 = vmul.f32 0.032258064, %v160_v33  ;;  %v176_v40 = vmul.f32 %v408_v35, %v167_v22 }
 0x1af   :  { %419 = vrsqrt.f32 %v531_v34  ;;  %v178_v49 = vsel %vm177_vm2, %v167_v22, %v176_v40  ;;  %vm212_vm13 = vcmp.eq.f32.partialorder %v531_v34, inf  ;;  %v215_v20 = vand.u32 2147483648, %v531_v34 }
 0x1b0   :  { %v410_v36 = vpop.eup %409  ;;  %v166_v37 = vpop.xlane.xlu1 %165  ;;  %v181_v58 = vsel %vm179_vm3, %v180_v44, %v178_v49  ;;  %vm214_vm14 = vcmp.eq.f32.partialorder %v531_v34, 0.0  ;;  %vm337_vm2 = vcmask 523264   ;;  %vm339_vm3 = vcmask 785408  }
 0x1b1   :  { %v190_v38 = vmul.f32 %v410_v36, %v169_v24  ;;  %v534_v39 = vmul.f32 0.032258064, %v166_v37  ;;  %v231_v7 = vadd.f32 1e-06, %v181_v58 }
 0x1b3   :  { %v192_v42 = vsel %vm191_vm1, %v169_v24, %v190_v38  ;;  %421 = vrsqrt.f32 %v534_v39  ;;  %vm226_vm15 = vcmp.eq.f32.partialorder %v534_v39, inf  ;;  %vm228_vm0 = vcmp.eq.f32.partialorder %v534_v39, 0.0 }
 0x1b4   :  { %v412_v41 = vpop.eup %411  ;;  %v195_v51 = vsel %vm193_vm4, %v194_v45, %v192_v42  ;;  %vm335_vm1 = vcmask 261120  }
 0x1b5   :  { %v414_v43 = vpop.eup %413  ;;  %v183_v46 = vmul.f32 %v412_v41, %v168_v27  ;;  %v233_v63 = vadd.f32 1e-06, %v195_v51 }
 0x1b6   :  { %v204_v50 = vmul.f32 %v414_v43, %v171_v28 }
 0x1b7   :  { %v185_v52 = vsel %vm184_vm5, %v168_v27, %v183_v46  ;;  %423 = vrcp.f32 %v233_v63  ;;  %v229_v27 = vand.u32 2147483648, %v534_v39 }
 0x1b8   :  { %v416_v55 = vpop.eup %415  ;;  %v188_v59 = vsel %vm186_vm6, %v187_v53, %v185_v52  ;;  %v206_v0 = vsel %vm205_vm7, %v171_v28, %v204_v50 }
 0x1b9   :  { %v418_v57 = vpop.eup %417  ;;  %v197_v61 = vmul.f32 %v416_v55, %v170_v31  ;;  %v232_v9 = vadd.f32 1e-06, %v188_v59  ;;  %v209_v14 = vsel %vm207_vm8, %v208_v56, %v206_v0 }
 0x1ba   :  { %v218_v2 = vmul.f32 %v418_v57, %v173_v32  ;;  %v235_v22 = vadd.f32 1e-06, %v209_v14 }
 0x1bb   :  { %v199_v3 = vsel %vm198_vm9, %v170_v31, %v197_v61 }
 0x1bc   :  { %v420_v6 = vpop.eup %419  ;;  %v202_v10 = vsel %vm200_vm10, %v201_v1, %v199_v3  ;;  %v220_v12 = vsel %vm219_vm11, %v173_v32, %v218_v2 }
 0x1bd   :  { %v234_v15 = vadd.f32 1e-06, %v202_v10  ;;  %v223_v16 = vsel %vm221_vm12, %v222_v4, %v220_v12  ;;  %v211_v18 = vmul.f32 %v420_v6, %v531_v34  ;;  %v400_v4 = vld [vmem:[%s579_s2] ss:$0 sm:$0xff] }
 0x1be   :  { %v237_v19 = vadd.f32 1e-06, %v223_v16 }
 0x1bf   :  { %425 = vrcp.f32 %v234_v15  ;;  %v213_v21 = vsel %vm212_vm13, %v531_v34, %v211_v18 }
 0x1c0   :  { %427 = vrcp.f32 %v232_v9  ;;  %v216_v23 = vsel %vm214_vm14, %v215_v20, %v213_v21  ;;  %v422_v24 = vpop.eup %421 }
 0x1c1   :  { %429 = vrcp.f32 %v231_v7  ;;  %v236_v25 = vadd.f32 1e-06, %v216_v23  ;;  %v225_v26 = vmul.f32 %v422_v24, %v534_v39 }
 0x1c2   :  { %431 = vrcp.f32 %v237_v19 }
 0x1c3   :  { %433 = vrcp.f32 %v235_v22  ;;  %v227_v28 = vsel %vm226_vm15, %v534_v39, %v225_v26 }
 0x1c4   :  { %v230_v29 = vsel %vm228_vm0, %v229_v27, %v227_v28  ;;  %435 = vrcp.f32 %v236_v25  ;;  %v424_v31 = vpop.eup %423 }
 0x1c5   :  { %v238_v30 = vadd.f32 1e-06, %v230_v29  ;;  %v249_v38 = vmul.f32 %v424_v31, %v491_v47 }
 0x1c7   :  { %437 = vrcp.f32 %v238_v30 }
 0x1cc   :  { %v426_v32 = vpop.eup %425 }
 0x1cd   :  { %v428_v33 = vpop.eup %427  ;;  %v250_v35 = vmul.f32 %v426_v32, %v502_v60 }
 0x1ce   :  { %v430_v34 = vpop.eup %429  ;;  %v248_v37 = vmul.f32 %v428_v33, %v504_v62 }
 0x1cf   :  { %v432_v36 = vpop.eup %431  ;;  %v247_v41 = vmul.f32 %v430_v34, %v493_v48 }
 0x1d0   :  { %v434_v40 = vpop.eup %433  ;;  %v253_v39 = vmul.f32 %v432_v36, %v515_v8  ;;  %v263_v42 = vcombine.low %v248_v37, %v250_v35 }
 0x1d1   :  { %v436_v43 = vpop.eup %435  ;;  %v251_v44 = vmul.f32 %v434_v40, %v497_v54  ;;  %v255_v45 = vcombine.low %v247_v41, %v249_v38 }
 0x1d2   :  { %v252_v49 = vmul.f32 %v436_v43, %v511_v5  ;;  %v270_v50 = vrot.slane %v263_v42, %v471_v11 }
 0x1d3   :  { %v271_v62 = vcombine.low %v251_v44, %v253_v39  ;;  %v262_v47 = vrot.slane %v255_v45, %v471_v11 }
 0x1d4   :  { %v438_v46 = vpop.eup %437 }
 0x1d5   :  { %v254_v60 = vmul.f32 %v438_v46, %v521_v13  ;;  %v278_v48 = vrot.slane %v271_v62, %v471_v11  ;;  %v288_v52 = vcombine.high %v262_v47, %v270_v50  ;;  %v287_v53 = vcombine.low %v262_v47, %v270_v50 }
 0x1d7   :  { %v279_v51 = vcombine.low %v252_v49, %v254_v60  ;;  %v302_v56 = vrot.slane %v288_v52, %v473_v17  ;;  %v295_v13 = vrot.slane %v287_v53, %v473_v17 }
 0x1d9   :  { %v286_v8 = vrot.slane %v279_v51, %v471_v11 }
 0x1db   :  { %v304_v55 = vcombine.high %v278_v48, %v286_v8  ;;  %v303_v54 = vcombine.low %v278_v48, %v286_v8 }
 0x1dd   :  { %v318_v5 = vrot.slane %v304_v55, %v473_v17  ;;  %v311_v57 = vrot.slane %v303_v54, %v473_v17  ;;  %v399_v17 = vld [vmem:[%s578_s1] ss:$0 sm:$0xff] }
 0x1df   :  { %v321_v58 = vcombine.low %v302_v56, %v318_v5  ;;  %v320_v59 = vcombine.high %v295_v13, %v311_v57  ;;  %v319_v61 = vcombine.low %v295_v13, %v311_v57  ;;  %v322_v11 = vcombine.high %v302_v56, %v318_v5 }
 0x1e1   :  { %328 = vrot.lane.b32.xlu1 %v321_v58, %s441_s16  ;;  %324 = vrot.lane.b32.xlu0 %v320_v59, %s439_s14 }
 0x1e5   :  { %332 = vrot.lane.b32.xlu1 %v322_v11, %s440_s15 }
 0x253   :  { %v329_v63 = vpop.permute.xlu1 %328  ;;  %v325_v0 = vpop.permute.xlu0 %324 }
 0x254   :  { %v336_v1 = vsel %vm335_vm1, %v319_v61, %v325_v0 }
 0x255   :  { %v338_v3 = vsel %vm337_vm2, %v336_v1, %v329_v63 }
 0x257   :  { %v333_v2 = vpop.permute.xlu1 %332 }
 0x258   :  { %v340_v6 = vsel %vm339_vm3, %v338_v3, %v333_v2 }
 0x259   :  { %v348_v7 = vmul.f32 %v399_v17, %v340_v6 }
 0x25b   :  { %v356_v9 = vadd.f32 %v400_v4, %v348_v7 }
 0x25d   :  { %357 = vst [vmem:[#allocation2] sm:$0xff] %v356_v9 }
 0x264   :  { %v376_v10 = vld [vmem:[#allocation2] sm:$0xf] }
 0x265   :  { %377 = vst [vmem:[%s580_s3] sm:$0xf] %v376_v10 }

</bundles_post_ra>
